<compile_context>
chip_gen: v7x
topology: tpu7x:2x2x1
jax: 0.10.0
libtpu: 0.0.40
codegen_flags: <defaults>
</compile_context>

<pallas_src>
import math
from functools import partial

import jax
import jax.numpy as jnp
from jax import lax
from jax.experimental import pallas as pl
from jax.experimental.pallas import tpu as pltpu


# ---------------------------------------------------------------------------
# Small shared helpers (run inside kernels)
# ---------------------------------------------------------------------------
def _exp(x, exp_bf16):
    if exp_bf16:
        return jnp.exp(x.astype(jnp.bfloat16)).astype(jnp.float32)
    return jnp.exp(x)


def _softmax_rows(s, exp_bf16, approx_recip):
    m = jnp.max(s, axis=-1, keepdims=True)
    e = _exp(s - m, exp_bf16)
    denom = jnp.sum(e, axis=-1, keepdims=True)
    return e * pl.reciprocal(denom, approx=approx_recip)


# ---------------------------------------------------------------------------
# One-shot kernels (full Sk resident per step)
# ---------------------------------------------------------------------------
def _attn_kernel(q_ref, k_ref, v_ref, o_ref, *, scale, exp_bf16, approx_recip):
    """No-mask variant. Blocks: q [bt,tq,Dk], k [bt,Sk,Dk], v [bt,Sk,Dv]."""
    # Fold 1/sqrt(key_size) into Q (tq*Dk multiplies, dtype preserved).
    q = q_ref[...] * scale
    s = jnp.einsum("bqd,bkd->bqk", q, k_ref[...],
                   preferred_element_type=jnp.float32)
    p = _softmax_rows(s, exp_bf16, approx_recip)
    # dropout(p=0.0) is identity.
    out = jnp.einsum("bqk,bkd->bqd", p.astype(v_ref.dtype), v_ref[...],
                     preferred_element_type=jnp.float32)
    o_ref[...] = out.astype(o_ref.dtype)


def _attn_kernel_masked(q_ref, k_ref, v_ref, m_ref, o_ref, *,
                        scale, exp_bf16, approx_recip):
    """Masked variant. Mask block [bt, 1 or tq, Sk] int8 (nonzero => mask out)."""
    q = q_ref[...] * scale
    s = jnp.einsum("bqd,bkd->bqk", q, k_ref[...],
                   preferred_element_type=jnp.float32)
    # Compare the int8 mask directly; broadcasts over the query axis if [.,1,Sk].
    s = jnp.where(m_ref[...] != 0, jnp.float32(-1e9), s)
    p = _softmax_rows(s, exp_bf16, approx_recip)
    out = jnp.einsum("bqk,bkd->bqd", p.astype(v_ref.dtype), v_ref[...],
                     preferred_element_type=jnp.float32)
    o_ref[...] = out.astype(o_ref.dtype)


# ---------------------------------------------------------------------------
# Flash-style kernels (grid axis over Sk, running max/sum/acc in scratch)
# ---------------------------------------------------------------------------
def _flash_update(s, v, m_sc, l_sc, acc_sc, exp_bf16):
    m_prev = m_sc[...]
    m_new = jnp.maximum(m_prev, jnp.max(s, axis=-1, keepdims=True))
    alpha = jnp.exp(m_prev - m_new)
    p = _exp(s - m_new, exp_bf16)
    l_sc[...] = alpha * l_sc[...] + jnp.sum(p, axis=-1, keepdims=True)
    acc_sc[...] = alpha * acc_sc[...] + jnp.einsum(
        "bqk,bkd->bqd", p.astype(v.dtype), v,
        preferred_element_type=jnp.float32)
    m_sc[...] = m_new


def _flash_init(m_sc, l_sc, acc_sc):
    m_sc[...] = jnp.full_like(m_sc, -jnp.inf)
    l_sc[...] = jnp.zeros_like(l_sc)
    acc_sc[...] = jnp.zeros_like(acc_sc)


def _flash_finalize(o_ref, m_sc, l_sc, acc_sc, approx_recip):
    inv = pl.reciprocal(l_sc[...], approx=approx_recip)
    o_ref[...] = (acc_sc[...] * inv).astype(o_ref.dtype)


def _flash_tail_guard(s, v, kv, tk, sk):
    """Neutralize padded key columns/rows when Sk % tk != 0 (static branch)."""
    col = lax.broadcasted_iota(jnp.int32, s.shape, 2) + kv * tk
    s = jnp.where(col < sk, s, jnp.float32(-1e30))
    vrow = lax.broadcasted_iota(jnp.int32, v.shape, 1) + kv * tk
    v = jnp.where(vrow < sk, v, jnp.array(0, v.dtype))
    return s, v


def _flash_kernel(q_ref, k_ref, v_ref, o_ref, m_sc, l_sc, acc_sc, *,
                  scale, sk, tk, tail, exp_bf16, approx_recip):
    kv = pl.program_id(2)

    @pl.when(kv == 0)
    def _():
        _flash_init(m_sc, l_sc, acc_sc)

    q = q_ref[...] * scale
    v = v_ref[...]
    s = jnp.einsum("bqd,bkd->bqk", q, k_ref[...],
                   preferred_element_type=jnp.float32)
    if tail:  # static flag: only emitted when Sk % tk != 0
        s, v = _flash_tail_guard(s, v, kv, tk, sk)
    _flash_update(s, v, m_sc, l_sc, acc_sc, exp_bf16)

    @pl.when(kv == pl.num_programs(2) - 1)
    def _():
        _flash_finalize(o_ref, m_sc, l_sc, acc_sc, approx_recip)


def _flash_kernel_masked(q_ref, k_ref, v_ref, m_ref, o_ref, m_sc, l_sc, acc_sc, *,
                         scale, sk, tk, tail, exp_bf16, approx_recip):
    kv = pl.program_id(2)

    @pl.when(kv == 0)
    def _():
        _flash_init(m_sc, l_sc, acc_sc)

    q = q_ref[...] * scale
    v = v_ref[...]
    s = jnp.einsum("bqd,bkd->bqk", q, k_ref[...],
                   preferred_element_type=jnp.float32)
    s = jnp.where(m_ref[...] != 0, jnp.float32(-1e9), s)
    if tail:
        s, v = _flash_tail_guard(s, v, kv, tk, sk)
    _flash_update(s, v, m_sc, l_sc, acc_sc, exp_bf16)

    @pl.when(kv == pl.num_programs(2) - 1)
    def _():
        _flash_finalize(o_ref, m_sc, l_sc, acc_sc, approx_recip)


# ---------------------------------------------------------------------------
# VMEM-aware planning
# ---------------------------------------------------------------------------
def _vmem_capacity_bytes():
    try:
        cap = int(pltpu.get_tpu_info().vmem_capacity_bytes)
        if cap > 0:
            return cap
    except Exception:
        pass
    return 64 * 1024 * 1024  # conservative: v7x per-TensorCore VMEM


def _oneshot_step_bytes(bt, tq, Sk, Dk, Dv, itemsize, has_mask, mq):
    qkv = 2 * (tq * Dk + Sk * Dk + Sk * Dv + tq * Dv) * itemsize  # double-buffered
    msk = 2 * ((1 if mq == 1 else tq) * Sk) if has_mask else 0    # int8
    score = 3 * tq * Sk * 4                                       # s/e/p f32 copies
    return bt * (qkv + msk + score)


def _flash_step_bytes(bt, tq, tk, Dk, Dv, itemsize, has_mask, mq):
    qkv = 2 * (tq * Dk + tk * Dk + tk * Dv + tq * Dv) * itemsize
    msk = 2 * ((1 if mq == 1 else tq) * tk) if has_mask else 0
    score = 3 * tq * tk * 4
    scratch = tq * (2 + Dv) * 4                                    # m/l/acc f32
    return bt * (qkv + msk + score + scratch)


def _choose_plan(B, Sq, Sk, Dk, Dv, itemsize, has_mask, mq, budget, kv_tile):
    """Returns (mode, bt, tq, tk)."""
    if kv_tile is None:
        tq_cands = ([Sq] if Sq <= 1024 else []) + \
                   [t for t in (1024, 512, 256, 128) if t < Sq]
        for tq in tq_cands:
            if _oneshot_step_bytes(1, tq, Sk, Dk, Dv, itemsize, has_mask, mq) <= budget:
                bt = 1
                if tq == Sq and B > 1:
                    # Pack batch elements until the VMEM byte budget is hit.
                    for d in range(min(B, 4096), 0, -1):
                        if B % d == 0 and _oneshot_step_bytes(
                                d, tq, Sk, Dk, Dv, itemsize, has_mask, mq) <= budget:
                            bt = d
                            break
                return "oneshot", bt, tq, None
    # Flash path over Sk (forced via kv_tile, or full-Sk residency won't fit).
    tq = min(Sq, 256)
    if kv_tile is not None:
        tk = int(kv_tile)
    else:
        tk = 128
        for cand in (1024, 512, 256):
            if cand < Sk and _flash_step_bytes(
                    1, tq, cand, Dk, Dv, itemsize, has_mask, mq) <= budget:
                tk = cand
                break
    tk = min(tk, Sk)
    return "flash", 1, tq, tk


# ---------------------------------------------------------------------------
# Wrapper
# ---------------------------------------------------------------------------
def dot_attention(Q, K, V, mask_out=None, *, kv_tile=None,
                  approx_recip=True, exp_in_bf16=None):
    """Pallas DotAttention forward.

    Q: [..., Sq, Dk], K: [..., Sk, Dk], V: [..., Sk, Dv]
    mask_out: optional bool/int [..., 1, Sk] or [..., Sq, Sk] (True => -1e9)
    kv_tile:  force the flash (Sk-tiled) path with this key tile (multiple of 128)
    Note: fully-masked rows yield uniform attention (matches masked_fill+softmax).
    """
    *batch_shape, Sq, Dk = Q.shape
    Sk = K.shape[-2]
    Dv = V.shape[-1]
    batch_shape = tuple(batch_shape)
    B = int(math.prod(batch_shape)) if batch_shape else 1

    Qf = Q.reshape(B, Sq, Dk)
    Kf = K.reshape(B, Sk, Dk)
    Vf = V.reshape(B, Sk, Dv)

    scale = 1.0 / math.sqrt(Dk)
    itemsize = jnp.dtype(Q.dtype).itemsize
    if exp_in_bf16 is None:
        exp_in_bf16 = (Q.dtype == jnp.bfloat16)  # EUP bf16 exp on v6e/v7x

    has_mask = mask_out is not None
    mq = int(mask_out.shape[-2]) if has_mask else 1

    cap = _vmem_capacity_bytes()
    budget = int(cap * 0.45)                       # tiling byte budget
    vmem_limit = min(int(cap * 0.75), 128 * 1024 * 1024)

    mode, bt, tq, tk = _choose_plan(B, Sq, Sk, Dk, Dv, itemsize,
                                    has_mask, mq, budget, kv_tile)

    if has_mask:
        # Broadcast only the leading dims; keep the query axis un-broadcast and
        # int8 so mask HBM traffic stays small.
        mask = jnp.broadcast_to(mask_out, (*batch_shape, mq, Sk))
        mask = mask.reshape(B, mq, Sk).astype(jnp.int8)

    cost = pl.CostEstimate(
        flops=2 * B * Sq * Sk * (Dk + Dv),
        transcendentals=B * Sq * Sk,
        bytes_accessed=(Qf.size + Kf.size + Vf.size + B * Sq * Dv) * itemsize
                       + (B * mq * Sk if has_mask else 0),
    )
    out_shape = jax.ShapeDtypeStruct((B, Sq, Dv), Q.dtype)

    if mode == "oneshot":
        grid = (pl.cdiv(B, bt), pl.cdiv(Sq, tq))
        in_specs = [
            pl.BlockSpec((bt, tq, Dk), lambda b, q: (b, q, 0)),
            pl.BlockSpec((bt, Sk, Dk), lambda b, q: (b, 0, 0)),
            pl.BlockSpec((bt, Sk, Dv), lambda b, q: (b, 0, 0)),
        ]
        out_spec = pl.BlockSpec((bt, tq, Dv), lambda b, q: (b, q, 0))
        scratch = []
        if has_mask:
            if mq == 1:
                in_specs.append(pl.BlockSpec((bt, 1, Sk), lambda b, q: (b, 0, 0)))
            else:
                in_specs.append(pl.BlockSpec((bt, tq, Sk), lambda b, q: (b, q, 0)))
            kernel = partial(_attn_kernel_masked, scale=scale,
                             exp_bf16=exp_in_bf16, approx_recip=approx_recip)
            args = (Qf, Kf, Vf, mask)
        else:
            kernel = partial(_attn_kernel, scale=scale,
                             exp_bf16=exp_in_bf16, approx_recip=approx_recip)
            args = (Qf, Kf, Vf)
        dims = ("parallel", "parallel")
    else:
        grid = (pl.cdiv(B, bt), pl.cdiv(Sq, tq), pl.cdiv(Sk, tk))
        tail = (Sk % tk) != 0
        in_specs = [
            pl.BlockSpec((bt, tq, Dk), lambda b, q, k: (b, q, 0)),
            pl.BlockSpec((bt, tk, Dk), lambda b, q, k: (b, k, 0)),
            pl.BlockSpec((bt, tk, Dv), lambda b, q, k: (b, k, 0)),
        ]
        out_spec = pl.BlockSpec((bt, tq, Dv), lambda b, q, k: (b, q, 0))
        scratch = [
            pltpu.VMEM((bt, tq, 1), jnp.float32),   # running max
            pltpu.VMEM((bt, tq, 1), jnp.float32),   # running sum
            pltpu.VMEM((bt, tq, Dv), jnp.float32),  # running acc
        ]
        if has_mask:
            if mq == 1:
                in_specs.append(pl.BlockSpec((bt, 1, tk), lambda b, q, k: (b, 0, k)))
            else:
                in_specs.append(pl.BlockSpec((bt, tq, tk), lambda b, q, k: (b, q, k)))
            kernel = partial(_flash_kernel_masked, scale=scale, sk=Sk, tk=tk,
                             tail=tail, exp_bf16=exp_in_bf16,
                             approx_recip=approx_recip)
            args = (Qf, Kf, Vf, mask)
        else:
            kernel = partial(_flash_kernel, scale=scale, sk=Sk, tk=tk,
                             tail=tail, exp_bf16=exp_in_bf16,
                             approx_recip=approx_recip)
            args = (Qf, Kf, Vf)
        dims = ("parallel", "parallel", "arbitrary")

    out = pl.pallas_call(
        kernel,
        out_shape=out_shape,
        grid_spec=pltpu.PrefetchScalarGridSpec(
            num_scalar_prefetch=0,
            grid=grid,
            in_specs=in_specs,
            out_specs=out_spec,
            scratch_shapes=scratch,
        ),
        compiler_params=pltpu.CompilerParams(
            dimension_semantics=dims,
            vmem_limit_bytes=vmem_limit,
        ),
        cost_estimate=cost,
    )(*args)

    return out.reshape(*batch_shape, Sq, Dv)


# ---------------------------------------------------------------------------
# Reference + test
# ---------------------------------------------------------------------------
def _reference(Q, K, V, mask_out, key_size):
    scores = jnp.einsum("...qd,...kd->...qk", Q, K) / math.sqrt(key_size)
    if mask_out is not None:
        scores = jnp.where(mask_out, -1e9, scores)
    attn = jax.nn.softmax(scores, axis=-1)
    return jnp.einsum("...qk,...kd->...qd", attn, V)


if __name__ == "__main__":
    keys = jax.random.split(jax.random.PRNGKey(0), 8)

    # --- Small shape: one-shot path (masked + unmasked) ---------------------
    B, Sq, Sk, Dk, Dv = 2, 8, 8, 32, 32
    Q = jax.random.normal(keys[0], (B, Sq, Dk), dtype=jnp.float32)
    K = jax.random.normal(keys[1], (B, Sk, Dk), dtype=jnp.float32)
    V = jax.random.normal(keys[2], (B, Sk, Dv), dtype=jnp.float32)
    mask_out = jax.random.bernoulli(keys[3], 0.25, (B, 1, Sk))  # True => block

    out = dot_attention(Q, K, V, mask_out)
    jax.block_until_ready(out)
    ref = _reference(Q, K, V, mask_out, Dk)
    assert jnp.allclose(out, ref, atol=2e-3, rtol=2e-3), (
        f"masked one-shot max err {jnp.max(jnp.abs(out - ref))}")

    out_nm = dot_attention(Q, K, V, None)
    jax.block_until_ready(out_nm)
    ref_nm = _reference(Q, K, V, None, Dk)
    assert jnp.allclose(out_nm, ref_nm, atol=2e-3, rtol=2e-3), (
        f"no-mask one-shot max err {jnp.max(jnp.abs(out_nm - ref_nm))}")

    # --- Flash (Sk-tiled) path, forced via kv_tile ---------------------------
    B2, Sq2, Sk2 = 2, 16, 256
    Q2 = jax.random.normal(keys[4], (B2, Sq2, Dk), dtype=jnp.float32)
    K2 = jax.random.normal(keys[5], (B2, Sk2, Dk), dtype=jnp.float32)
    V2 = jax.random.normal(keys[6], (B2, Sk2, Dv), dtype=jnp.float32)
    mask2 = jax.random.bernoulli(keys[7], 0.25, (B2, 1, Sk2))

    out2 = dot_attention(Q2, K2, V2, mask2, kv_tile=128)
    jax.block_until_ready(out2)
    ref2 = _reference(Q2, K2, V2, mask2, Dk)
    assert jnp.allclose(out2, ref2, atol=2e-3, rtol=2e-3), (
        f"masked flash max err {jnp.max(jnp.abs(out2 - ref2))}")

    out2_nm = dot_attention(Q2, K2, V2, None, kv_tile=128)
    jax.block_until_ready(out2_nm)
    ref2_nm = _reference(Q2, K2, V2, None, Dk)
    assert jnp.allclose(out2_nm, ref2_nm, atol=2e-3, rtol=2e-3), (
        f"no-mask flash max err {jnp.max(jnp.abs(out2_nm - ref2_nm))}")

    print("KERNEL_OK")
</pallas_src>

<mosaic_0001>
module attributes {stable_mosaic.version = 11 : i64} {
  func.func @_attn_kernel_masked(%arg0: i32, %arg1: i32, %arg2: memref<2x8x32xf32, #tpu.memory_space<vmem>>, %arg3: memref<2x8x32xf32, #tpu.memory_space<vmem>>, %arg4: memref<2x8x32xf32, #tpu.memory_space<vmem>>, %arg5: memref<2x1x8xi8, #tpu.memory_space<vmem>>, %arg6: memref<2x8x32xf32, #tpu.memory_space<vmem>>) attributes {dimension_semantics = [#tpu.dimension_semantics<parallel>, #tpu.dimension_semantics<parallel>], iteration_bounds = array<i64: 1, 1>, scalar_prefetch = 0 : i64, scratch_operands = 0 : i64, tpu.core_type = #tpu.core_type<tc>, window_params = [{transform_indices = @transform_0, window_bounds = array<i64: 2, 8, 32>}, {transform_indices = @transform_1, window_bounds = array<i64: 2, 8, 32>}, {transform_indices = @transform_2, window_bounds = array<i64: 2, 8, 32>}, {transform_indices = @transform_3, window_bounds = array<i64: 2, 1, 8>}, {transform_indices = @transform_4, window_bounds = array<i64: 2, 8, 32>}]} {
    %c0 = arith.constant 0 : index
    %c0_0 = arith.constant 0 : index
    %c0_1 = arith.constant 0 : index
    %0 = vector.load %arg2[%c0, %c0_0, %c0_1] : memref<2x8x32xf32, #tpu.memory_space<vmem>>, vector<2x8x32xf32>
    %cst = arith.constant 0.176776692 : f32
    %1 = vector.broadcast %cst : f32 to vector<2x8x32xf32>
    %2 = arith.mulf %0, %1 : vector<2x8x32xf32>
    %c0_2 = arith.constant 0 : index
    %c0_3 = arith.constant 0 : index
    %c0_4 = arith.constant 0 : index
    %3 = vector.load %arg3[%c0_2, %c0_3, %c0_4] : memref<2x8x32xf32, #tpu.memory_space<vmem>>, vector<2x8x32xf32>
    "tpu.trace_start"() <{level = 10 : i32, message = "bqd,bkd->bqk"}> : () -> ()
    %cst_5 = arith.constant dense<0.000000e+00> : vector<2x8x8xf32>
    %4 = tpu.matmul %2, %3, %cst_5 {dimension_numbers = #tpu.dot_dimension_numbers<[2], [2], [1], [1], [0, 0, 0, 1, 1, 1], [0], [0]>} : vector<2x8x32xf32>, vector<2x8x32xf32>, vector<2x8x8xf32> -> vector<2x8x8xf32>
    "tpu.trace_stop"() : () -> ()
    %c0_6 = arith.constant 0 : index
    %c0_7 = arith.constant 0 : index
    %c0_8 = arith.constant 0 : index
    %5 = vector.load %arg5[%c0_6, %c0_7, %c0_8] : memref<2x1x8xi8, #tpu.memory_space<vmem>>, vector<2x1x8xi8>
    %c0_i8 = arith.constant 0 : i8
    %6 = vector.broadcast %c0_i8 : i8 to vector<2x1x8xi8>
    %7 = arith.cmpi ne, %5, %6 : vector<2x1x8xi8>
    %cst_9 = arith.constant -1.000000e+09 : f32
    %8 = vector.shape_cast %7 : vector<2x1x8xi1> to vector<2x1x8xi1>
    %9 = vector.broadcast %8 : vector<2x1x8xi1> to vector<2x8x8xi1>
    %10 = vector.broadcast %cst_9 : f32 to vector<2x8x8xf32>
    %11 = arith.select %9, %10, %4 : vector<2x8x8xi1>, vector<2x8x8xf32>
    %cst_10 = arith.constant dense<0xFF800000> : vector<2x8xf32>
    %12 = vector.multi_reduction <maximumf>, %11, %cst_10 [2] : vector<2x8x8xf32> to vector<2x8xf32>
    %13 = vector.shape_cast %12 : vector<2x8xf32> to vector<2x8x1xf32>
    %14 = vector.broadcast %13 : vector<2x8x1xf32> to vector<2x8x8xf32>
    %15 = arith.subf %11, %14 : vector<2x8x8xf32>
    %16 = math.exp %15 : vector<2x8x8xf32>
    %cst_11 = arith.constant dense<0.000000e+00> : vector<2x8xf32>
    %17 = vector.multi_reduction <add>, %16, %cst_11 [2] : vector<2x8x8xf32> to vector<2x8xf32>
    %18 = vector.shape_cast %17 : vector<2x8xf32> to vector<2x8x1xf32>
    %19 = tpu.reciprocal %18 {approx = true} : vector<2x8x1xf32> -> vector<2x8x1xf32>
    %20 = vector.broadcast %19 : vector<2x8x1xf32> to vector<2x8x8xf32>
    %21 = arith.mulf %16, %20 : vector<2x8x8xf32>
    %c0_12 = arith.constant 0 : index
    %c0_13 = arith.constant 0 : index
    %c0_14 = arith.constant 0 : index
    %22 = vector.load %arg4[%c0_12, %c0_13, %c0_14] : memref<2x8x32xf32, #tpu.memory_space<vmem>>, vector<2x8x32xf32>
    "tpu.trace_start"() <{level = 10 : i32, message = "bqk,bkd->bqd"}> : () -> ()
    %cst_15 = arith.constant dense<0.000000e+00> : vector<2x8x32xf32>
    %23 = tpu.matmul %21, %22, %cst_15 {dimension_numbers = #tpu.dot_dimension_numbers<[2], [1], [1], [2], [0, 0, 0, 1, 1, 2], [0], [0]>} : vector<2x8x8xf32>, vector<2x8x32xf32>, vector<2x8x32xf32> -> vector<2x8x32xf32>
    "tpu.trace_stop"() : () -> ()
    %c0_16 = arith.constant 0 : index
    %c0_17 = arith.constant 0 : index
    %c0_18 = arith.constant 0 : index
    %24 = vector.load %arg6[%c0_16, %c0_17, %c0_18] : memref<2x8x32xf32, #tpu.memory_space<vmem>>, vector<2x8x32xf32>
    tpu.vector_store %arg6[%c0_16, %c0_17, %c0_18], %23 {strides = array<i32>} : memref<2x8x32xf32, #tpu.memory_space<vmem>>, vector<2x8x32xf32>,
    return
  }
  func.func @transform_0(%arg0: i32, %arg1: i32) -> (i32, i32, i32) {
    %c0_i32 = arith.constant 0 : i32
    %c0_i32_0 = arith.constant 0 : i32
    return %arg0, %arg1, %c0_i32 : i32, i32, i32
  }
  func.func @transform_1(%arg0: i32, %arg1: i32) -> (i32, i32, i32) {
    %c0_i32 = arith.constant 0 : i32
    %c0_i32_0 = arith.constant 0 : i32
    %c0_i32_1 = arith.constant 0 : i32
    return %arg0, %c0_i32, %c0_i32_0 : i32, i32, i32
  }
  func.func @transform_2(%arg0: i32, %arg1: i32) -> (i32, i32, i32) {
    %c0_i32 = arith.constant 0 : i32
    %c0_i32_0 = arith.constant 0 : i32
    %c0_i32_1 = arith.constant 0 : i32
    return %arg0, %c0_i32, %c0_i32_0 : i32, i32, i32
  }
  func.func @transform_3(%arg0: i32, %arg1: i32) -> (i32, i32, i32) {
    %c0_i32 = arith.constant 0 : i32
    %c0_i32_0 = arith.constant 0 : i32
    %c0_i32_1 = arith.constant 0 : i32
    return %arg0, %c0_i32, %c0_i32_0 : i32, i32, i32
  }
  func.func @transform_4(%arg0: i32, %arg1: i32) -> (i32, i32, i32) {
    %c0_i32 = arith.constant 0 : i32
    %c0_i32_0 = arith.constant 0 : i32
    return %arg0, %arg1, %c0_i32 : i32, i32, i32
  }
}

</mosaic_0001>

<bundles_post_ra>
// kernel: tpu_custom_call.1
= control target key start
LH: loop header
LB: loop body
LE: loop exit
PB: predicated region body
PF: predicated region fallthrough
CT: control target
= control target key end

     0   :  { %9 = vsyncpa [#allocation3], 0  ;;  %s703_s0 = inlined_call_operand.hbm [shape: f32[2,8,32], index: 0, kind: input, shape index: {}]   ;;  %s704_s1 = inlined_call_operand.hbm [shape: f32[2,8,32], index: 1, kind: input, shape index: {}]   ;;  %s705_s2 = inlined_call_operand.hbm [shape: f32[2,8,32], index: 2, kind: input, shape index: {}]   ;;  %s706_s3 = inlined_call_operand.vmem [shape: s8[2,1,8], index: 3, kind: input, shape index: {}]   ;;  %s707_s4 = inlined_call_operand.hbm [shape: f32[2,8,32], index: 4, kind: output, shape index: {}]  }
   0x1   :  { %10 = vsyncpa [#allocation6], 0 }
   0x2   :  { %11 = vsyncpa [#allocation4], 0  ;;  %s580_s15 = smov [#allocation5]   ;;  %s581_s17 = smov [#allocation2]  }
   0x3   :  { %s29_s16 = sshll.u32 %s580_s15, 4  ;;  %s17_s18 = sshll.u32 %s581_s17, 4  ;;  %s30_s16 = int_to_ptr.vmem [resolvable:$true] %s29_s16  ;;  %s614_s18 = int_to_ptr.vmem [resolvable:$true] %s17_s18 }
   0x4   :  { %s486_s21 = scalar_lea.hbm %s704_s1, 256 }
   0x5   :  { %p487_p0 = scmp.ne.s32.totalorder %s704_s1, %s486_s21  ;;  %p490_p1 = scmp.lt.u32.totalorder %s486_s21, %s704_s1 }
   0x7   :  { %p492_p2 = pnand %p490_p1, %p487_p0 }
   0x9   :  { %495 = shalt.err (!%p492_p2)
}
   0xa   :  { %s496_s26 = scalar_lea.vmem %s30_s16, 256  ;;  %p501_p4 = scmp.lt.s32.totalorder %s30_s16, %s30_s16 }
   0xb   :  { %p497_p3 = scmp.ne.s32.totalorder %s30_s16, %s496_s26  ;;  %p502_p5 = scmp.lt.s32.totalorder %s496_s26, %s496_s26 }
   0xd   :  { %p503_p6 = por %p502_p5, %p501_p4 }
   0xf   :  { %p504_p7 = pnand %p503_p6, %p497_p3 }
  0x11   :  { %507 = shalt.err (!%p504_p7)
}
  0x12   :  { %s582_s27 = smov 128   ;;  %s583_s28 = smov 8  }
  0x13   :  { %35 = dma.hbm_to_vmem [thread:$0]  %s704_s1, 256, %s30_s16, [#allocation6], %s582_s27, %s582_s27, %s583_s28  }
  0x14   :  { %s508_s7 = scalar_lea.hbm %s703_s0, 256 }
  0x15   :  { %p509_p8 = scmp.ne.s32.totalorder %s703_s0, %s508_s7  ;;  %p512_p9 = scmp.lt.u32.totalorder %s508_s7, %s703_s0 }
  0x17   :  { %p514_p10 = pnand %p512_p9, %p509_p8 }
  0x19   :  { %517 = shalt.err (!%p514_p10)
}
  0x1a   :  { %s518_s12 = scalar_lea.vmem %s614_s18, 256  ;;  %p523_p12 = scmp.lt.s32.totalorder %s614_s18, %s614_s18 }
  0x1b   :  { %p519_p11 = scmp.ne.s32.totalorder %s614_s18, %s518_s12  ;;  %p524_p13 = scmp.lt.s32.totalorder %s518_s12, %s518_s12 }
  0x1d   :  { %p525_p0 = por %p524_p13, %p523_p12 }
  0x1f   :  { %p526_p1 = pnand %p525_p0, %p519_p11 }
  0x21   :  { %529 = shalt.err (!%p526_p1)
}
  0x22   :  { %23 = dma.hbm_to_vmem [thread:$0]  %s703_s0, 256, %s614_s18, [#allocation3], %s582_s27, %s582_s27, %s583_s28  }
  0x23   :  { %s584_s14 = smov [#allocation7]   ;;  %s530_s19 = scalar_lea.hbm %s705_s2, 256 }
  0x24   :  { %s41_s15 = sshll.u32 %s584_s14, 4  ;;  %p531_p2 = scmp.ne.s32.totalorder %s705_s2, %s530_s19  ;;  %s42_s15 = int_to_ptr.vmem [resolvable:$true] %s41_s15 }
  0x25   :  { %p534_p3 = scmp.lt.u32.totalorder %s530_s19, %s705_s2 }
  0x27   :  { %p536_p4 = pnand %p534_p3, %p531_p2 }
  0x29   :  { %539 = shalt.err (!%p536_p4)
}
  0x2a   :  { %s540_s24 = scalar_lea.vmem %s42_s15, 256  ;;  %p545_p6 = scmp.lt.s32.totalorder %s42_s15, %s42_s15 }
  0x2b   :  { %p541_p5 = scmp.ne.s32.totalorder %s42_s15, %s540_s24  ;;  %p546_p7 = scmp.lt.s32.totalorder %s540_s24, %s540_s24 }
  0x2d   :  { %p547_p8 = por %p546_p7, %p545_p6 }
  0x2f   :  { %p548_p9 = pnand %p547_p8, %p541_p5 }
  0x31   :  { %551 = shalt.err (!%p548_p9)
}
  0x32   :  { %47 = dma.hbm_to_vmem [thread:$0]  %s705_s2, 256, %s42_s15, [#allocation6], %s582_s27, %s582_s27, %s583_s28  }
  0x33   :  { %574 = dma.done.wait [#allocation3], 256  }
  0x34   :  { %575 = vsyncadd [#allocation3], 4294967040 }
  0x35   :  { %576 = dma.done.wait [#allocation6], 512  }
  0x36   :  { %577 = vsyncadd [#allocation6], 4294966784  ;;  %v585_v0 = vmov 0.0   ;;  %vm586_vm0 = vmmov 0   ;;  %vm67_vm1 = vcmask 261120   ;;  %v65_v1 = vld [vmem:[#allocation5] sm:$0xff]  ;;  %v232_v12 = vlaneseq }
  0x37   :  { %449 = vmatprep.subr.mxu0 %v585_v0  ;;  %451 = vmatprep.mubr.msk.f32.mxu0 %vm586_vm0, %v585_v0  ;;  %v61_v2 = vld [vmem:[#allocation2] sm:$0xff]  ;;  %v66_v3 = vld [vmem:[#allocation5 + $0x8] sm:$0xff]  ;;  %v62_v5 = vld [vmem:[#allocation2 + $0x8] sm:$0xff]  ;;  %v587_v9 = vmov 0   ;;  %vm244_vm8 = vcmask 64512  }
  0x38   :  { %454 = vmatprep.subr.mxu1 %v585_v0  ;;  %456 = vmatprep.mubr.msk.f32.mxu1 %vm586_vm0, %v585_v0  ;;  %v63_v4 = vmul.f32 0.17677669, %v61_v2  ;;  %v64_v6 = vmul.f32 0.17677669, %v62_v5  ;;  %v220_v7 = vld [vmem:[%s706_s3] sm:$0x1] }
  0x39   :  { %450 = vmatpush3.xpose.msk.msra.mxu0 %vm67_vm1, %v65_v1  ;;  %455 = vmatpush3.xpose.msk.msra.mxu1 %vm67_vm1, %v66_v3  ;;  %v221_v8 = vld [vmem:[%s706_s3 + $0x1] sm:$0x1]  ;;  %vm222_vm2 = vnez %v220_v7  ;;  %v233_v15 = vshrl.u32 %v232_v12, 7  ;;  %v268_v40 = vld [vmem:[#allocation7 + $0x8] sm:$0xff]  ;;  %s588_s3 = smov [#allocation8]  }
  0x3a   :  { %459 = vmatprep.subr.mxu0 %v585_v0  ;;  %464 = vmatprep.subr.mxu1 %v585_v0  ;;  %vm223_vm3 = vnez %v221_v8  ;;  %v224_v10 = vsel %vm222_vm2, 16843009, %v587_v9  ;;  %v267_v39 = vld [vmem:[#allocation7] sm:$0xff]  ;;  %s422_s30 = sshll.u32 %s588_s3, 4  ;;  %s423_s30 = int_to_ptr.vmem [resolvable:$true] %s422_s30 }
  0x3b   :  { %v225_v11 = vsel %vm223_vm3, 16843009, %v587_v9  ;;  %v226_v13 = vunpack.c.0.s8 %v224_v10  ;;  %v234_v16 = vsub.s32 0, %v233_v15  ;;  %s552_s5 = scalar_lea.vmem %s423_s30, 256  ;;  %p557_p11 = scmp.lt.s32.totalorder %s423_s30, %s423_s30 }
  0x3c   :  { %452 = vmatmul.mubr.msk.f32.vlgmr.msra.gmra.mrb[0].mxu0 %vm67_vm1, %v63_v4  ;;  %457 = vmatmul.mubr.msk.f32.vlgmr.msra.gmra.mrb[0].mxu1 %vm67_vm1, %v64_v6  ;;  %v227_v14 = vunpack.c.0.s8 %v225_v11  ;;  %p553_p10 = scmp.ne.s32.totalorder %s423_s30, %s552_s5  ;;  %p558_p12 = scmp.lt.s32.totalorder %s552_s5, %s552_s5 }
  0x3d   :  { %461 = vmatprep.mubr.msk.f32.mxu0 %vm586_vm0, %v585_v0  ;;  %466 = vmatprep.mubr.msk.f32.mxu1 %vm586_vm0, %v585_v0  ;;  %vm228_vm4 = vcmp.ne.s32.totalorder %v226_v13, 0 }
  0x3e   :  { %vm229_vm5 = vcmp.ne.s32.totalorder %v227_v14, 0  ;;  %v230_v17 = vsel %vm228_vm4, 1, %v587_v9  ;;  %460 = vmatpush3.msra.mxu0 %v267_v39  ;;  %465 = vmatpush3.msra.mxu1 %v268_v40  ;;  %p559_p13 = por %p558_p12, %p557_p11 }
  0x3f   :  { %v231_v18 = vsel %vm229_vm5, 1, %v587_v9  ;;  %v235_v19 = vrot.slane %v230_v17, %v234_v16 }
  0x40   :  { %v239_v20 = vrot.slane %v231_v18, %v234_v16  ;;  %p560_p0 = pnand %p559_p13, %p553_p10 }
  0x41   :  { %vm240_vm6 = vcmp.eq.s32.totalorder %v235_v19, 1 }
  0x42   :  { %vm241_vm7 = vcmp.eq.s32.totalorder %v239_v20, 1 }
 0x10f   :  { %v140_v21 = vpop.f32.mrb[0].mxu0  ;;  %v216_v22 = vpop.f32.mrb[0].mxu1 }
 0x110   :  { %v242_v23 = vsel %vm240_vm6, -1e+09, %v140_v21  ;;  %v453_v24 = vpop.f32.mrb[1].mxu0  ;;  %v243_v25 = vsel %vm241_vm7, -1e+09, %v216_v22  ;;  %v458_v26 = vpop.f32.mrb[1].mxu1 }
 0x111   :  { %v245_v27 = vsel %vm244_vm8, %v242_v23, -inf  ;;  %v248_v28 = vsel %vm244_vm8, %v243_v25, -inf }
 0x112   :  { %246 = vmax.xlane.f32.xlu0 %v245_v27 }
 0x116   :  { %249 = vmax.xlane.f32.xlu0 %v248_v28 }
 0x19f   :  { %v247_v29 = vpop.xlane.xlu0 %246 }
 0x1a0   :  { %v251_v30 = vsub.f32 %v242_v23, %v247_v29 }
 0x1a2   :  { %v253_v31 = vmul.f32 1.442695, %v251_v30 }
 0x1a3   :  { %v250_v32 = vpop.xlane.xlu0 %249 }
 0x1a4   :  { %478 = vpow2.f32 %v253_v31  ;;  %v252_v33 = vsub.f32 %v243_v25, %v250_v32 }
 0x1a6   :  { %v255_v34 = vmul.f32 1.442695, %v252_v33 }
 0x1a8   :  { %480 = vpow2.f32 %v255_v34 }
 0x1ae   :  { %v479_v35 = vpop.eup %478 }
 0x1af   :  { %v257_v36 = vsel %vm244_vm8, %v479_v35, 0.0 }
 0x1b0   :  { %258 = vadd.xlane.f32.xlu1 %v257_v36 }
 0x1b2   :  { %v481_v37 = vpop.eup %480 }
 0x1b3   :  { %v260_v38 = vsel %vm244_vm8, %v481_v37, 0.0 }
 0x1b4   :  { %261 = vadd.xlane.f32.xlu1 %v260_v38 }
 0x23d   :  { %v259_v41 = vpop.xlane.xlu1 %258 }
 0x23e   :  { %482 = vrcp.f32 %v259_v41 }
 0x241   :  { %v262_v42 = vpop.xlane.xlu1 %261 }
 0x242   :  { %484 = vrcp.f32 %v262_v42 }
 0x248   :  { %v483_v43 = vpop.eup %482 }
 0x249   :  { %v265_v44 = vmul.f32 %v483_v43, %v479_v35 }
 0x24b   :  { %462 = vmatmul.mubr.msk.f32.vlgmr.msra.gmra.mrb[2].mxu0 %vm244_vm8, %v265_v44 }
 0x24c   :  { %v485_v45 = vpop.eup %484 }
 0x24d   :  { %v266_v46 = vmul.f32 %v485_v45, %v481_v37 }
 0x24f   :  { %467 = vmatmul.mubr.msk.f32.vlgmr.msra.gmra.mrb[2].mxu1 %vm244_vm8, %v266_v46 }
 0x31e   :  { %v338_v47 = vpop.f32.mrb[2].mxu0 }
 0x31f   :  { %415 = vst.msk [vmem:[#allocation8] sm:$0xff] %vm67_vm1, %v338_v47  ;;  %v463_v48 = vpop.f32.mrb[3].mxu0 }
 0x322   :  { %v411_v49 = vpop.f32.mrb[2].mxu1 }
 0x323   :  { %416 = vst.msk [vmem:[#allocation8 + $0x8] sm:$0xff] %vm67_vm1, %v411_v49  ;;  %v468_v50 = vpop.f32.mrb[3].mxu1 }
 0x324   :  { %563 = shalt.err (!%p560_p0)
}
 0x325   :  { %s564_s8 = scalar_lea.hbm %s707_s4, 256 }
 0x326   :  { %p565_p1 = scmp.ne.s32.totalorder %s707_s4, %s564_s8  ;;  %p568_p2 = scmp.lt.u32.totalorder %s564_s8, %s707_s4 }
 0x328   :  { %p570_p3 = pnand %p568_p2, %p565_p1 }
 0x32a   :  { %573 = shalt.err (!%p570_p3)
}
 0x32b   :  { %428 = dma.vmem_to_hbm [thread:$0]  %s423_s30, 256, %s707_s4, [#allocation4], %s582_s27, %s582_s27, %s583_s28  }
 0x32c   :  { %578 = dma.done.wait [#allocation4], 256  }
 0x32d   :  { %579 = vsyncadd [#allocation4], 4294967040 }
 0x32e   :  { %432 = vsyncpa [#allocation3], 1 }
 0x32f   :  { %433 = vsyncpa [#allocation6], 1 }
 0x330   :  { %434 = vsyncpa [#allocation4], 1 }

</bundles_post_ra>
